<compile_context>
chip_gen: v5e
topology: v5e:2x2
jax: 0.10.0
libtpu: 0.0.40
codegen_flags: <defaults>
</compile_context>

<pallas_src>
import functools

import jax
import jax.numpy as jnp
from jax import lax
from jax.experimental import pallas as pl
from jax.experimental.pallas import tpu as pltpu

BN_EPS = 1e-5


# ---------------------------------------------------------------------------
# Fused kernel. Grid = (2 sweeps, N tiles); sublanes = Cout, lanes = OH*OW.
# ---------------------------------------------------------------------------
def _fused_conv_bn_scale_kernel(w_ref, p_ref, a_ref, c_ref, o_ref,
                                s1_ref, s2_ref, mul_ref, add_ref,
                                *, inv_m, n_lane_blocks):
    # w_ref: (Cout, K)        bf16 conv weights, K = KH*KW*Cin
    # p_ref: (K, OHWp)        bf16 im2col patch tile for batch image t
    # a_ref: (Cout, 1)        f32  gamma * scale
    # c_ref: (Cout, 1)        f32  beta  * scale
    # o_ref: (1, Cout, OHWp)  f32  output tile for batch image t
    # s1/s2: (Cout, 128)      f32  lane-resident partial sum / sum-of-squares
    # mul/add: (Cout, 1)      f32  folded BN+scale FMA coefficients
    p = pl.program_id(0)   # 0 = stats sweep, 1 = normalize sweep
    t = pl.program_id(1)   # batch-image tile

    @pl.when(jnp.logical_and(p == 0, t == 0))
    def _init():
        s1_ref[...] = jnp.zeros_like(s1_ref)
        s2_ref[...] = jnp.zeros_like(s2_ref)

    # Conv tile on the MXU (bf16 operands, f32 accumulate). Recomputed in sweep 1
    # so the activation never round-trips HBM (conv bias omitted: it cancels under
    # training-mode BN mean subtraction).
    y = jnp.dot(w_ref[...], p_ref[...], preferred_element_type=jnp.float32)

    @pl.when(p == 0)
    def _accumulate():
        # Lane-resident partials: VPU adds only; the single XLU cross-lane reduce
        # happens once at the start of sweep 1. Zero-padded lane columns (if any)
        # contribute exactly nothing since the patches there are zero.
        s1 = s1_ref[...]
        s2 = s2_ref[...]
        for b in range(n_lane_blocks):
            blk = y[:, b * 128:(b + 1) * 128]
            s1 = s1 + blk
            s2 = s2 + blk * blk
        s1_ref[...] = s1
        s2_ref[...] = s2

    @pl.when(jnp.logical_and(p == 1, t == 0))
    def _finalize_stats():
        mean = jnp.sum(s1_ref[...], axis=1, keepdims=True) * inv_m   # (Cout, 1)
        ex2 = jnp.sum(s2_ref[...], axis=1, keepdims=True) * inv_m    # (Cout, 1)
        var = jnp.maximum(ex2 - mean * mean, 0.0)   # clamp single-pass cancellation
        inv_std = lax.rsqrt(var + BN_EPS)
        # Folded affine: (y - mean) * inv_std * (gamma*scale) + beta*scale
        mul = a_ref[...] * inv_std
        mul_ref[...] = mul
        add_ref[...] = c_ref[...] - mean * mul

    @pl.when(p == 1)
    def _normalize():
        o_ref[0] = (y * mul_ref[...] + add_ref[...]).astype(o_ref.dtype)


def fused_conv_bn_scale(w_ck, patches, a_c1, c_c1, *, m_valid, n_tiles, ohw_pad):
    Cout, K = w_ck.shape
    kernel = functools.partial(
        _fused_conv_bn_scale_kernel,
        inv_m=1.0 / float(m_valid),
        n_lane_blocks=ohw_pad // 128,
    )
    flops = 2 * (2 * Cout * K * n_tiles * ohw_pad)          # matmul runs in both sweeps
    bytes_accessed = (2 * patches.size * patches.dtype.itemsize   # streamed twice
                      + w_ck.size * w_ck.dtype.itemsize
                      + (a_c1.size + c_c1.size) * 4
                      + n_tiles * Cout * ohw_pad * 4)
    return pl.pallas_call(
        kernel,
        out_shape=jax.ShapeDtypeStruct((n_tiles, Cout, ohw_pad), jnp.float32),
        grid_spec=pltpu.PrefetchScalarGridSpec(
            num_scalar_prefetch=0,
            grid=(2, n_tiles),
            in_specs=[
                pl.BlockSpec((Cout, K), lambda p, t: (0, 0)),       # resident weights
                pl.BlockSpec((K, ohw_pad), lambda p, t: (0, t)),    # patch tile (pipelined)
                pl.BlockSpec((Cout, 1), lambda p, t: (0, 0)),
                pl.BlockSpec((Cout, 1), lambda p, t: (0, 0)),
            ],
            # p*t keeps the output block pinned to block 0 during the stats sweep
            # (no wasted write-backs of untouched blocks), then walks the batch
            # tiles during the normalize sweep. Each block's visits are consecutive.
            out_specs=pl.BlockSpec((1, Cout, ohw_pad), lambda p, t: (p * t, 0, 0)),
            scratch_shapes=[
                pltpu.VMEM((Cout, 128), jnp.float32),   # partial sums
                pltpu.VMEM((Cout, 128), jnp.float32),   # partial sums of squares
                pltpu.VMEM((Cout, 1), jnp.float32),     # folded multiplier
                pltpu.VMEM((Cout, 1), jnp.float32),     # folded addend
            ],
        ),
        compiler_params=pltpu.CompilerParams(
            # Both axes sequential: the stats scratch is carried across the grid.
            dimension_semantics=("arbitrary", "arbitrary"),
            vmem_limit_bytes=48 * 1024 * 1024,   # modest; fits v7x's 64 MiB physical
        ),
        cost_estimate=pl.CostEstimate(flops=flops, transcendentals=0,
                                      bytes_accessed=bytes_accessed),
    )(w_ck, patches, a_c1, c_c1)


# ---------------------------------------------------------------------------
# Wrapper: im2col built directly in (K, M) layout (no patch-tensor transpose),
# weight permuted instead; output comes back already in (N, Cout, OH*OW).
# ---------------------------------------------------------------------------
@functools.partial(jax.jit, static_argnames=("stride", "padding"))
def conv2d_scaled_with_bn(x, weight, bias, gamma, beta, scale, *, stride, padding):
    """Forward of Conv2dScaledWithBN. x: [N, Cin, H, W] f32 -> [N, Cout, OH, OW] f32."""
    del bias  # cancels exactly under training-mode BN (mean subtraction); see kernel.
    N, Cin, H, W = x.shape
    Cout, _, KH, KW = weight.shape
    oh = (H + 2 * padding - KH) // stride + 1
    ow = (W + 2 * padding - KW) // stride + 1
    ohw = oh * ow
    ohw_pad = ((ohw + 127) // 128) * 128
    K = KH * KW * Cin

    # bf16 for MXU operands; cast x first so the (9x larger) patch tensor is built
    # at half width. Channel-first transpose of x (small) so taps stack straight
    # into (K, M) layout without transposing the patch tensor.
    xt = jnp.transpose(x.astype(jnp.bfloat16), (1, 0, 2, 3))        # (Cin, N, H, W)
    xp = jnp.pad(xt, ((0, 0), (0, 0), (padding, padding), (padding, padding)))
    taps = []
    for i in range(KH):
        for j in range(KW):
            taps.append(lax.slice(
                xp, (0, 0, i, j),
                (Cin, N, i + (oh - 1) * stride + 1, j + (ow - 1) * stride + 1),
                (1, 1, stride, stride)))                            # (Cin, N, OH, OW)
    p = jnp.stack(taps, axis=0).reshape(K, N, ohw)                  # (K, N, OH*OW)
    if ohw_pad != ohw:
        p = jnp.pad(p, ((0, 0), (0, 0), (0, ohw_pad - ohw)))        # zero lanes -> no stat effect
    patches = p.reshape(K, N * ohw_pad)

    # Compensating permutation on the tiny weight: K ordering is (kh, kw, cin).
    w_ck = jnp.transpose(weight, (0, 2, 3, 1)).reshape(Cout, K).astype(jnp.bfloat16)
    a = (gamma * scale).reshape(Cout, 1).astype(jnp.float32)
    c = (beta * scale).reshape(Cout, 1).astype(jnp.float32)

    out = fused_conv_bn_scale(w_ck, patches, a, c,
                              m_valid=N * ohw, n_tiles=N, ohw_pad=ohw_pad)
    if ohw_pad != ohw:
        out = out[:, :, :ohw]
    return out.reshape(N, Cout, oh, ow)                             # NCHW, free split


# ---------------------------------------------------------------------------
# Pure-JAX f32 reference (unfused, includes the conv bias) for the sanity check.
# ---------------------------------------------------------------------------
def reference(x, weight, bias, gamma, beta, scale, *, stride, padding):
    y = lax.conv_general_dilated(
        x, weight, window_strides=(stride, stride),
        padding=[(padding, padding), (padding, padding)],
        dimension_numbers=("NCHW", "OIHW", "NCHW"))
    y = y + bias[None, :, None, None]
    mean = jnp.mean(y, axis=(0, 2, 3), keepdims=True)
    var = jnp.mean((y - mean) ** 2, axis=(0, 2, 3), keepdims=True)
    y = (y - mean) * lax.rsqrt(var + BN_EPS)
    y = y * gamma[None, :, None, None] + beta[None, :, None, None]
    return y * scale[None, :, None, None]


if __name__ == "__main__":
    # Module config: Conv2dScaledWithBN(in_channels=4, out_channels=8,
    #                                   kernel_size=3, stride=1, padding=1)
    N, Cin, H, W = 2, 4, 16, 16
    Cout, Ksz, stride, padding = 8, 3, 1, 1

    key = jax.random.PRNGKey(0)
    k_x, k_w, k_b, k_g, k_be, k_s = jax.random.split(key, 6)

    # Conv weight exactly as in __init__ (oblique branch): N(0,1), then unit norm
    # per output channel. Remaining parameters get small non-trivial values so the
    # bias-cancellation and folded BN+scale paths are exercised by the check.
    weight = jax.random.normal(k_w, (Cout, Cin, Ksz, Ksz), dtype=jnp.float32)
    norms = jnp.linalg.norm(weight.reshape(Cout, -1), axis=1).reshape(Cout, 1, 1, 1)
    weight = weight / norms
    bias = 0.1 * jax.random.normal(k_b, (Cout,), dtype=jnp.float32)
    gamma = 1.0 + 0.1 * jax.random.normal(k_g, (Cout,), dtype=jnp.float32)
    beta = 0.1 * jax.random.normal(k_be, (Cout,), dtype=jnp.float32)
    scale = 1.0 + 0.1 * jax.random.normal(k_s, (Cout,), dtype=jnp.float32)

    x = jax.random.normal(k_x, (N, Cin, H, W), dtype=jnp.float32)

    out = conv2d_scaled_with_bn(x, weight, bias, gamma, beta, scale,
                                stride=stride, padding=padding)
    out = jax.block_until_ready(out)

    ref = reference(x, weight, bias, gamma, beta, scale,
                    stride=stride, padding=padding)
    assert out.shape == (N, Cout, H, W)
    # Tolerance loosened vs the f32 reference because the matmul operands are bf16
    # (accumulation, BN stats and the final FMA stay f32).
    assert jnp.allclose(out, ref, atol=5e-2, rtol=5e-2), (
        "mismatch vs reference; max abs diff = %e" % float(jnp.max(jnp.abs(out - ref))))

    print("KERNEL_OK")
</pallas_src>

<mosaic_0001>
module attributes {stable_mosaic.version = 11 : i64} {
  func.func @_fused_conv_bn_scale_kernel(%arg0: i32, %arg1: i32, %arg2: memref<8x36xbf16, #tpu.memory_space<vmem>>, %arg3: memref<36x256xbf16, #tpu.memory_space<vmem>>, %arg4: memref<8x1xf32, #tpu.memory_space<vmem>>, %arg5: memref<8x1xf32, #tpu.memory_space<vmem>>, %arg6: memref<1x8x256xf32, #tpu.memory_space<vmem>>, %arg7: memref<8x128xf32, #tpu.memory_space<vmem>>, %arg8: memref<8x128xf32, #tpu.memory_space<vmem>>, %arg9: memref<8x1xf32, #tpu.memory_space<vmem>>, %arg10: memref<8x1xf32, #tpu.memory_space<vmem>>) attributes {dimension_semantics = [#tpu.dimension_semantics<arbitrary>, #tpu.dimension_semantics<arbitrary>], iteration_bounds = array<i64: 2, 2>, scalar_prefetch = 0 : i64, scratch_operands = 4 : i64, tpu.core_type = #tpu.core_type<tc>, window_params = [{pipeline_mode = #tpu.pipeline_mode<synchronous>, transform_indices = @transform_0, window_bounds = array<i64: 8, 36>}, {transform_indices = @transform_1, window_bounds = array<i64: 36, 256>}, {pipeline_mode = #tpu.pipeline_mode<synchronous>, transform_indices = @transform_2, window_bounds = array<i64: 8, 1>}, {pipeline_mode = #tpu.pipeline_mode<synchronous>, transform_indices = @transform_3, window_bounds = array<i64: 8, 1>}, {transform_indices = @transform_4, window_bounds = array<i64: 1, 8, 256>}]} {
    %c0_i32 = arith.constant 0 : i32
    %0 = arith.cmpi eq, %arg0, %c0_i32 : i32
    %c0_i32_0 = arith.constant 0 : i32
    %1 = arith.cmpi eq, %arg1, %c0_i32_0 : i32
    %2 = arith.andi %0, %1 : i1
    %3 = arith.extui %2 : i1 to i32
    %c0_i32_1 = arith.constant 0 : i32
    %4 = arith.cmpi ne, %3, %c0_i32_1 : i32
    scf.if %4 {
      %cst_11 = arith.constant 0.000000e+00 : f32
      %19 = vector.broadcast %cst_11 : f32 to vector<8x128xf32>
      %c0_12 = arith.constant 0 : index
      %c0_13 = arith.constant 0 : index
      %20 = vector.load %arg7[%c0_12, %c0_13] : memref<8x128xf32, #tpu.memory_space<vmem>>, vector<8x128xf32>
      tpu.vector_store %arg7[%c0_12, %c0_13], %19 {strides = array<i32>} : memref<8x128xf32, #tpu.memory_space<vmem>>, vector<8x128xf32>,
      %cst_14 = arith.constant 0.000000e+00 : f32
      %21 = vector.broadcast %cst_14 : f32 to vector<8x128xf32>
      %c0_15 = arith.constant 0 : index
      %c0_16 = arith.constant 0 : index
      %22 = vector.load %arg8[%c0_15, %c0_16] : memref<8x128xf32, #tpu.memory_space<vmem>>, vector<8x128xf32>
      tpu.vector_store %arg8[%c0_15, %c0_16], %21 {strides = array<i32>} : memref<8x128xf32, #tpu.memory_space<vmem>>, vector<8x128xf32>,
    } else {
    }
    %c0 = arith.constant 0 : index
    %c0_2 = arith.constant 0 : index
    %5 = vector.load %arg2[%c0, %c0_2] : memref<8x36xbf16, #tpu.memory_space<vmem>>, vector<8x36xbf16>
    %c0_3 = arith.constant 0 : index
    %c0_4 = arith.constant 0 : index
    %6 = vector.load %arg3[%c0_3, %c0_4] : memref<36x256xbf16, #tpu.memory_space<vmem>>, vector<36x256xbf16>
    %cst = arith.constant dense<0.000000e+00> : vector<8x256xf32>
    %7 = tpu.matmul %5, %6, %cst {dimension_numbers = #tpu.dot_dimension_numbers<[1], [0], [0], [1], [0, 0, 1, 1], [], []>} : vector<8x36xbf16>, vector<36x256xbf16>, vector<8x256xf32> -> vector<8x256xf32>
    %c0_i32_5 = arith.constant 0 : i32
    %8 = arith.cmpi eq, %arg0, %c0_i32_5 : i32
    %9 = arith.extui %8 : i1 to i32
    %c0_i32_6 = arith.constant 0 : i32
    %10 = arith.cmpi ne, %9, %c0_i32_6 : i32
    scf.if %10 {
      %c0_11 = arith.constant 0 : index
      %c0_12 = arith.constant 0 : index
      %19 = vector.load %arg7[%c0_11, %c0_12] : memref<8x128xf32, #tpu.memory_space<vmem>>, vector<8x128xf32>
      %c0_13 = arith.constant 0 : index
      %c0_14 = arith.constant 0 : index
      %20 = vector.load %arg8[%c0_13, %c0_14] : memref<8x128xf32, #tpu.memory_space<vmem>>, vector<8x128xf32>
      %21 = vector.extract_strided_slice %7 {offsets = [0, 0], sizes = [8, 128], strides = [1, 1]} : vector<8x256xf32> to vector<8x128xf32>
      %22 = arith.addf %19, %21 : vector<8x128xf32>
      %23 = arith.mulf %21, %21 : vector<8x128xf32>
      %24 = arith.addf %20, %23 : vector<8x128xf32>
      %25 = vector.extract_strided_slice %7 {offsets = [0, 128], sizes = [8, 128], strides = [1, 1]} : vector<8x256xf32> to vector<8x128xf32>
      %26 = arith.addf %22, %25 : vector<8x128xf32>
      %27 = arith.mulf %25, %25 : vector<8x128xf32>
      %28 = arith.addf %24, %27 : vector<8x128xf32>
      %c0_15 = arith.constant 0 : index
      %c0_16 = arith.constant 0 : index
      %29 = vector.load %arg7[%c0_15, %c0_16] : memref<8x128xf32, #tpu.memory_space<vmem>>, vector<8x128xf32>
      tpu.vector_store %arg7[%c0_15, %c0_16], %26 {strides = array<i32>} : memref<8x128xf32, #tpu.memory_space<vmem>>, vector<8x128xf32>,
      %c0_17 = arith.constant 0 : index
      %c0_18 = arith.constant 0 : index
      %30 = vector.load %arg8[%c0_17, %c0_18] : memref<8x128xf32, #tpu.memory_space<vmem>>, vector<8x128xf32>
      tpu.vector_store %arg8[%c0_17, %c0_18], %28 {strides = array<i32>} : memref<8x128xf32, #tpu.memory_space<vmem>>, vector<8x128xf32>,
    } else {
    }
    %c1_i32 = arith.constant 1 : i32
    %11 = arith.cmpi eq, %arg0, %c1_i32 : i32
    %c0_i32_7 = arith.constant 0 : i32
    %12 = arith.cmpi eq, %arg1, %c0_i32_7 : i32
    %13 = arith.andi %11, %12 : i1
    %14 = arith.extui %13 : i1 to i32
    %c0_i32_8 = arith.constant 0 : i32
    %15 = arith.cmpi ne, %14, %c0_i32_8 : i32
    scf.if %15 {
      %c0_11 = arith.constant 0 : index
      %c0_12 = arith.constant 0 : index
      %19 = vector.load %arg7[%c0_11, %c0_12] : memref<8x128xf32, #tpu.memory_space<vmem>>, vector<8x128xf32>
      %cst_13 = arith.constant dense<0.000000e+00> : vector<8xf32>
      %20 = vector.multi_reduction <add>, %19, %cst_13 [1] : vector<8x128xf32> to vector<8xf32>
      %21 = vector.shape_cast %20 : vector<8xf32> to vector<8x1xf32>
      %cst_14 = arith.constant 0.001953125 : f32
      %22 = vector.broadcast %cst_14 : f32 to vector<8x1xf32>
      %23 = arith.mulf %21, %22 : vector<8x1xf32>
      %c0_15 = arith.constant 0 : index
      %c0_16 = arith.constant 0 : index
      %24 = vector.load %arg8[%c0_15, %c0_16] : memref<8x128xf32, #tpu.memory_space<vmem>>, vector<8x128xf32>
      %cst_17 = arith.constant dense<0.000000e+00> : vector<8xf32>
      %25 = vector.multi_reduction <add>, %24, %cst_17 [1] : vector<8x128xf32> to vector<8xf32>
      %26 = vector.shape_cast %25 : vector<8xf32> to vector<8x1xf32>
      %cst_18 = arith.constant 0.001953125 : f32
      %27 = vector.broadcast %cst_18 : f32 to vector<8x1xf32>
      %28 = arith.mulf %26, %27 : vector<8x1xf32>
      %29 = arith.mulf %23, %23 : vector<8x1xf32>
      %30 = arith.subf %28, %29 : vector<8x1xf32>
      %cst_19 = arith.constant 0.000000e+00 : f32
      %31 = vector.broadcast %cst_19 : f32 to vector<8x1xf32>
      %32 = arith.maximumf %30, %31 : vector<8x1xf32>
      %cst_20 = arith.constant 9.99999974E-6 : f32
      %33 = vector.broadcast %cst_20 : f32 to vector<8x1xf32>
      %34 = arith.addf %32, %33 : vector<8x1xf32>
      %35 = math.rsqrt %34 : vector<8x1xf32>
      %c0_21 = arith.constant 0 : index
      %c0_22 = arith.constant 0 : index
      %36 = vector.load %arg4[%c0_21, %c0_22] : memref<8x1xf32, #tpu.memory_space<vmem>>, vector<8x1xf32>
      %37 = arith.mulf %36, %35 : vector<8x1xf32>
      %c0_23 = arith.constant 0 : index
      %c0_24 = arith.constant 0 : index
      %38 = vector.load %arg9[%c0_23, %c0_24] : memref<8x1xf32, #tpu.memory_space<vmem>>, vector<8x1xf32>
      tpu.vector_store %arg9[%c0_23, %c0_24], %37 {strides = array<i32>} : memref<8x1xf32, #tpu.memory_space<vmem>>, vector<8x1xf32>,
      %c0_25 = arith.constant 0 : index
      %c0_26 = arith.constant 0 : index
      %39 = vector.load %arg5[%c0_25, %c0_26] : memref<8x1xf32, #tpu.memory_space<vmem>>, vector<8x1xf32>
      %40 = arith.mulf %23, %37 : vector<8x1xf32>
      %41 = arith.subf %39, %40 : vector<8x1xf32>
      %c0_27 = arith.constant 0 : index
      %c0_28 = arith.constant 0 : index
      %42 = vector.load %arg10[%c0_27, %c0_28] : memref<8x1xf32, #tpu.memory_space<vmem>>, vector<8x1xf32>
      tpu.vector_store %arg10[%c0_27, %c0_28], %41 {strides = array<i32>} : memref<8x1xf32, #tpu.memory_space<vmem>>, vector<8x1xf32>,
    } else {
    }
    %c1_i32_9 = arith.constant 1 : i32
    %16 = arith.cmpi eq, %arg0, %c1_i32_9 : i32
    %17 = arith.extui %16 : i1 to i32
    %c0_i32_10 = arith.constant 0 : i32
    %18 = arith.cmpi ne, %17, %c0_i32_10 : i32
    scf.if %18 {
      %c0_11 = arith.constant 0 : index
      %c0_12 = arith.constant 0 : index
      %19 = vector.load %arg9[%c0_11, %c0_12] : memref<8x1xf32, #tpu.memory_space<vmem>>, vector<8x1xf32>
      %20 = vector.broadcast %19 : vector<8x1xf32> to vector<8x256xf32>
      %21 = arith.mulf %7, %20 : vector<8x256xf32>
      %c0_13 = arith.constant 0 : index
      %c0_14 = arith.constant 0 : index
      %22 = vector.load %arg10[%c0_13, %c0_14] : memref<8x1xf32, #tpu.memory_space<vmem>>, vector<8x1xf32>
      %23 = vector.broadcast %22 : vector<8x1xf32> to vector<8x256xf32>
      %24 = arith.addf %21, %23 : vector<8x256xf32>
      %c0_15 = arith.constant 0 : index
      %c0_16 = arith.constant 0 : index
      %c0_17 = arith.constant 0 : index
      %25 = vector.load %arg6[%c0_15, %c0_16, %c0_17] : memref<1x8x256xf32, #tpu.memory_space<vmem>>, vector<1x8x256xf32>
      %26 = vector.shape_cast %25 : vector<1x8x256xf32> to vector<8x256xf32>
      %27 = vector.shape_cast %24 : vector<8x256xf32> to vector<1x8x256xf32>
      tpu.vector_store %arg6[%c0_15, %c0_16, %c0_17], %27 {strides = array<i32>} : memref<1x8x256xf32, #tpu.memory_space<vmem>>, vector<1x8x256xf32>,
    } else {
    }
    return
  }
  func.func @transform_0(%arg0: i32, %arg1: i32) -> (i32, i32) {
    %c0_i32 = arith.constant 0 : i32
    %c0_i32_0 = arith.constant 0 : i32
    %c0_i32_1 = arith.constant 0 : i32
    return %c0_i32, %c0_i32_0 : i32, i32
  }
  func.func @transform_1(%arg0: i32, %arg1: i32) -> (i32, i32) {
    %c0_i32 = arith.constant 0 : i32
    %c0_i32_0 = arith.constant 0 : i32
    return %c0_i32, %arg1 : i32, i32
  }
  func.func @transform_2(%arg0: i32, %arg1: i32) -> (i32, i32) {
    %c0_i32 = arith.constant 0 : i32
    %c0_i32_0 = arith.constant 0 : i32
    %c0_i32_1 = arith.constant 0 : i32
    return %c0_i32, %c0_i32_0 : i32, i32
  }
  func.func @transform_3(%arg0: i32, %arg1: i32) -> (i32, i32) {
    %c0_i32 = arith.constant 0 : i32
    %c0_i32_0 = arith.constant 0 : i32
    %c0_i32_1 = arith.constant 0 : i32
    return %c0_i32, %c0_i32_0 : i32, i32
  }
  func.func @transform_4(%arg0: i32, %arg1: i32) -> (i32, i32, i32) {
    %0 = arith.muli %arg0, %arg1 : i32
    %c0_i32 = arith.constant 0 : i32
    %c0_i32_0 = arith.constant 0 : i32
    %c0_i32_1 = arith.constant 0 : i32
    return %0, %c0_i32, %c0_i32_0 : i32, i32, i32
  }
}

</mosaic_0001>

<bundles_post_ra>
// kernel: conv2d_scaled_with_bn.1
= control target key start
LH: loop header
LB: loop body
LE: loop exit
PB: predicated region body
PF: predicated region fallthrough
CT: control target
= control target key end

     0   :  { %s673_s15 = smov 0   ;;  %s675_s16 = smov 0   ;;  %s781_s0 = inlined_call_operand.vmem [shape: bf16[8,36], index: 0, kind: input, shape index: {}]   ;;  %s782_s1 = inlined_call_operand.vmem [shape: bf16[36,512], index: 1, kind: input, shape index: {}]   ;;  %s783_s2 = inlined_call_operand.vmem [shape: f32[8,1], index: 2, kind: input, shape index: {}]   ;;  %s784_s3 = inlined_call_operand.vmem [shape: f32[8,1], index: 3, kind: input, shape index: {}]   ;;  %s785_s4 = inlined_call_operand.vmem [shape: f32[2,8,256], index: 4, kind: output, shape index: {}]  }
   0x1   :  { %s677_s17 = smov 0   ;;  %s679_s18 = smov 0  }
   0x2   :  { %s681_s19 = smov 0   ;;  %s683_s20 = smov 0  }
   0x3   :  { %s685_s21 = smov 0  }
   0x4 LB: > { %s23_s22 = sadd.s32 1, %s636_s19  ;;  %s26_s23 = sadd.s32 1, %s640_s20  ;;  %s644_s21 = sphi %s685_s21, %s14_s21   ;;  %s640_s20 = sphi %s683_s20, %s791_s20   ;;  %s636_s19 = sphi %s681_s19, %s790_s19   ;;  %s632_s18 = sphi %s679_s18, %s789_s18   ;;  %s628_s17 = sphi %s677_s17, %s788_s17   ;;  %s624_s16 = sphi %s675_s16, %s787_s16   ;;  %s620_s15 = sphi %s673_s15, %s786_s15  }
   0x5   : > { %p24_p0 = scmp.ge.s32.totalorder %s23_s22, 2  ;;  %s54_s24 = sadd.s32 1, %s624_s16 }
   0x6   : > { %p61_p1 = scmp.ne.s32.totalorder %s624_s16, %s620_s15  ;;  %p62_p2 = scmp.eq.s32.totalorder %s644_s21, 0 }
   0x7   : > { %s793_s22 = smov (%p24_p0, %s23_s22), 0  ;;  %s795_s23 = smov (!%p24_p0, %s26_s23), %s640_s20 }
   0x8   : > { %s51_s25 = ssub.s32 %s636_s19, %s793_s22  ;;  %p63_p3 = por %p62_p2, %p61_p1 }
   0x9   : > { %p28_p4 = scmp.ge.s32.totalorder %s795_s23, 2  ;;  %p52_p5 = scmp.eq.s32.totalorder %s51_s25, 0 }
   0xa   : > { %p493_p6 = scmp.ge.s32.totalorder %s644_s21, 4 }
   0xb   : > { %s797_s23 = smov (%p28_p4, %s795_s23), 0 }
   0xc   : > { %s722_s26 = scalar_select %p52_p5, %s624_s16, %s54_s24  }
   0xd   : > { %166 = sbr.rel (%p493_p6) target bundleno = 27 (0x1b), region = 28 }
  0x12   : > { %169 = sbr.rel (!%p63_p3) target bundleno = 27 (0x1b), region = 32  ;;  %s171_s27 = sand.u32 (%p63_p3), 1, %s624_s16  }
  0x13   : > { %s521_s28 = sshll.u32 (%p63_p3), %s636_s19, 3  ;;  %s527_s29 = smul.u32 (%p63_p3), 40, %s171_s27 }
  0x14   : > { %s176_s6 = scalar_lea.vmem (%p63_p3), %s782_s1, %s521_s28 }
  0x15   : > { %v213_v0 = vld [vmem:[%s176_s6] sm:$0xff] (%p63_p3)  ;;  %v215_v1 = vld [vmem:[%s176_s6 + $0x10] sm:$0xff] (%p63_p3)  ;;  %s173_s7 = scalar_lea.vmem (%p63_p3), [#allocation6], %s527_s29 }
  0x16   : > { %v217_v2 = vld [vmem:[%s176_s6 + $0x20] sm:$0xff] (%p63_p3)  ;;  %214 = vst [vmem:[%s173_s7] sm:$0xff] (%p63_p3), %v213_v0  ;;  %v219_v3 = vld [vmem:[%s176_s6 + $0x30] sm:$0xff] (%p63_p3) }
  0x17   : > { %216 = vst [vmem:[%s173_s7 + $0x8] sm:$0xff] %v215_v1  ;;  %v221_v4 = vld [vmem:[%s176_s6 + $0x40] sm:$0xff] }
  0x18   : > { %218 = vst [vmem:[%s173_s7 + $0x10] sm:$0xff] %v217_v2 }
  0x19   : > { %220 = vst [vmem:[%s173_s7 + $0x18] sm:$0xff] %v219_v3 }
  0x1a   : > { %222 = vst [vmem:[%s173_s7 + $0x20] sm:$0xff] %v221_v4 }
  0x1b PF: > { %p496_p7 = scmp.ge.s32.totalorder %s644_s21, 1  ;;  %p227_p8 = scmp.lt.s32.totalorder %s644_s21, 5 }
  0x1d   : > { %p228_p9 = pnand %p496_p7, %p227_p8 }
  0x1e   : > { %s234_s8 = sand.u32 (!%p228_p9), 1, %s620_s15   ;;  %s261_s9 = smul.u32 (!%p228_p9), %s628_s17, %s632_s18 }
  0x1f   : > { %231 = sbr.rel (%p228_p9) target bundleno = 506 (0x1fa), region = 70  ;;  %p269_p10 = scmp.eq.s32.totalorder (!%p228_p9), %s632_s18, 0 }
  0x20   : > { %s528_s10 = smul.u32 (!%p228_p9), 40, %s234_s8  ;;  %p262_p11 = scmp.lt.s32.totalorder (!%p228_p9), %s261_s9, 1 }
  0x21   : > { %p270_p12 = scmp.eq.s32.totalorder (!%p228_p9), %s628_s17, 0 }
  0x22   : > { %s236_s24 = scalar_lea.vmem (!%p228_p9), [#allocation6], %s528_s10 }
  0x23   : > { %p271_p13 = pnand (!%p228_p9), %p270_p12, %p269_p10 }
  0x24   : > { %s799_s9 = smov (!%p262_p11, %s261_s9), 1 }
  0x25   : > { %s522_s11 = sshll.u32 %s799_s9, 4  ;;  %274 = sbr.rel (%p271_p13) target bundleno = 45 (0x2d), region = 78 }
  0x26   : > { %s742_s14 = scalar_lea.vmem %s785_s4, %s522_s11 }
  0x2a   : > { %v646_v5 = vmov 0.0  }
  0x2b   : > { %275 = vst [vmem:[#allocation2] sm:$0xff] %v646_v5 }
  0x2c   : > { %276 = vst [vmem:[#allocation3] sm:$0xff] %v646_v5 }
  0x2d PF: > { %v282_v6 = vld [vmem:[%s236_s24 + $0x20] sm:$0x33]  ;;  %vm312_vm0 = vcmask 1041408   ;;  %v509_v9 = vld [vmem:[%s236_s24 + $0x10] sm:$0xf]  ;;  %vm308_vm1 = vcmask 293888  }
  0x2e   : > { %v296_v7 = vunpack.c.l.b16 %v282_v6  ;;  %v297_v8 = vunpack.c.h.b16 %v282_v6  ;;  %v526_v12 = vld [vmem:[%s236_s24 + $0x14] sm:$0xf0]  ;;  %v525_v13 = vld [vmem:[%s236_s24 + $0x14] sm:$0xf]  ;;  %v511_v14 = vld [vmem:[%s236_s24 + $0x18] sm:$0xf0] }
  0x2f   : > { %v510_v17 = vor.u32 %v526_v12, %v509_v9  ;;  %v514_v18 = vor.u32 %v525_v13, %v511_v14  ;;  %v501_v19 = vld [vmem:[%s236_s24] sm:$0xf]  ;;  %v524_v20 = vld [vmem:[%s236_s24 + $0x4] sm:$0xf0]  ;;  %v523_v21 = vld [vmem:[%s236_s24 + $0x4] sm:$0xf] }
  0x30   : > { %v302_v10 = vpack.c.b16 %v296_v7, %v296_v7  ;;  %v303_v11 = vpack.c.b16 %v297_v8, %v297_v8  ;;  %v503_v22 = vld [vmem:[%s236_s24 + $0x8] sm:$0xf0]  ;;  %v502_v23 = vor.u32 %v524_v20, %v501_v19  ;;  %v277_v25 = vld [vmem:[%s781_s0] sm:$0xf]  ;;  %p517_p0 = scmp.ne.s32.totalorder %s632_s18, 0 }
  0x31   : > { %v506_v24 = vor.u32 %v523_v21, %v503_v22 }
  0x32   : > { %v314_v15 = vsel %vm312_vm0, %v302_v10, 0  ;;  %v317_v16 = vsel %vm312_vm0, %v303_v11, 0 }
  0x33   : > { %324 = vmatpush.bf16.msra.mxu0 %v314_v15  ;;  %337 = vmatpush.bf16.msra.mxu1 %v317_v16 }
  0x37   : > { %325 = vmatpush.bf16.msra.mxu0 %v510_v17  ;;  %338 = vmatpush.bf16.msra.mxu1 %v514_v18 }
  0x3b   : > { %326 = vmatpush.bf16.msra.mxu0 %v502_v23  ;;  %339 = vmatpush.bf16.msra.mxu1 %v506_v24 }
  0x3e   : > { %515 = vmatmul.msk.bf16.vlgmr.msra.gmra.mxu0 %vm308_vm1, %v277_v25  ;;  %516 = vmatmul.msk.bf16.vlgmr.msra.gmra.mxu1 %vm308_vm1, %v277_v25 }
  0xbb   : > { %v328_v26 = vpop.f32.mrf.mxu0  ;;  %v341_v27 = vpop.f32.mrf.mxu1 }
  0xbf   : > { %347 = sbr.rel (%p517_p0) target bundleno = 203 (0xcb), region = 82 }
  0xc3   : > { %v330_v28 = vpop.f32.mrf.mxu0  ;;  %v343_v29 = vpop.f32.mrf.mxu1 }
  0xc4   : > { %v348_v30 = vld [vmem:[#allocation2] sm:$0xff]  ;;  %v349_v31 = vld [vmem:[#allocation3] sm:$0xff]  ;;  %v351_v32 = vmul.f32 %v328_v26, %v328_v26  ;;  %v354_v33 = vmul.f32 %v341_v27, %v341_v27 }
  0xc5   : > { %v350_v34 = vadd.f32 %v348_v30, %v328_v26 }
  0xc6   : > { %v352_v35 = vadd.f32 %v351_v32, %v349_v31 }
  0xc7   : > { %v353_v36 = vadd.f32 %v350_v34, %v341_v27 }
  0xc8   : > { %v355_v37 = vadd.f32 %v354_v33, %v352_v35 }
  0xc9   : > { %356 = vst [vmem:[#allocation2] sm:$0xff] %v353_v36 }
  0xca   : > { %357 = vst [vmem:[#allocation3] sm:$0xff] %v355_v37 }
  0xcb PF: > { %p358_p1 = scmp.eq.s32.totalorder %s632_s18, 1 }
  0xcd   : > { %p359_p2 = pnand %p358_p1, %p270_p12 }
  0xcf   : > { %362 = sbr.rel (%p359_p2) target bundleno = 370 (0x172), region = 86 }
  0xd4   : > { %v363_v38 = vld [vmem:[#allocation2] sm:$0xff]  ;;  %v367_v39 = vld [vmem:[#allocation3] sm:$0xff]  ;;  %vm387_vm5 = vcmask 7168  }
  0xd5   : > { %364 = vadd.xlane.f32.xlu0 %v363_v38  ;;  %v385_v53 = vld [vmem:[%s783_s2] sm:$0xff] }
  0xd6   : > { %v389_v57 = vld [vmem:[%s784_s3] sm:$0xff] }
  0xdd   : > { %368 = vadd.xlane.f32.xlu0 %v367_v39 }
 0x148   : > { %v365_v40 = vpop.xlane.xlu0 %364 }
 0x149   : > { %v366_v41 = vmul.f32 0.001953125, %v365_v40 }
 0x14b   : > { %v371_v43 = vmul.f32 %v366_v41, %v366_v41 }
 0x150   : > { %v369_v42 = vpop.xlane.xlu0 %368 }
 0x151   : > { %v370_v44 = vmul.f32 0.001953125, %v369_v42 }
 0x153   : > { %v372_v45 = vsub.f32 %v370_v44, %v371_v43 }
 0x155   : > { %v373_v46 = vmax.f32 %v372_v45, 0.0 }
 0x157   : > { %v374_v47 = vadd.f32 1e-05, %v373_v46 }
 0x159   : > { %587 = vrsqrt.f32 %v374_v47  ;;  %vm381_vm3 = vweird.f32 %v374_v47 }
 0x15f   : > { %v588_v48 = vpop.eup %587 }
 0x160   : > { %v376_v49 = vmul.f32 %v588_v48, %v374_v47  ;;  %vm382_vm2 = vweird.f32 %v588_v48 }
 0x161   : > { %vm383_vm4 = vmor %vm381_vm3, %vm382_vm2 }
 0x162   : > { %v377_v50 = vmul.f32 %v588_v48, %v376_v49 }
 0x164   : > { %v378_v51 = vmul.f32 0.5, %v377_v50 }
 0x166   : > { %v379_v52 = vsub.f32 1.5, %v378_v51 }
 0x168   : > { %v380_v54 = vmul.f32 %v588_v48, %v379_v52 }
 0x16a   : > { %v384_v55 = vsel %vm383_vm4, %v588_v48, %v380_v54 }
 0x16b   : > { %v386_v56 = vmul.f32 %v385_v53, %v384_v55 }
 0x16d   : > { %388 = vst.msk [vmem:[#allocation4] sm:$0xff] %vm387_vm5, %v386_v56  ;;  %v390_v58 = vmul.f32 %v386_v56, %v366_v41 }
 0x16f   : > { %v391_v59 = vsub.f32 %v389_v57, %v390_v58 }
 0x171   : > { %392 = vst.msk [vmem:[#allocation5] sm:$0xff] %vm387_vm5, %v391_v59 }
 0x172 PF: > { %p518_p3 = scmp.ne.s32.totalorder %s632_s18, 1 }
 0x174   : > { %395 = sbr.rel (%p518_p3) target bundleno = 506 (0x1fa), region = 90 }
 0x179   : > { %v396_v60 = vld [vmem:[#allocation4] sm:$0xff]  ;;  %v647_v61 = vmov 0   ;;  %v404_v62 = vld [vmem:[#allocation5] sm:$0xff] }
 0x17a   : > { %589 = vset.pattern.permute.xlu0 %v647_v61 }
 0x17b   : > { %399 = vperm.xlu0 %589, %v396_v60  }
 0x183   : > { %407 = vperm.xlu0 %589, %v404_v62  }
 0x1ed   : > { %v400_v63 = vpop.permute.xlu0 %399 }
 0x1ee   : > { %v402_v0 = vmul.f32 %v400_v63, %v328_v26  ;;  %v403_v1 = vmul.f32 %v400_v63, %v341_v27 }
 0x1f5   : > { %v408_v2 = vpop.permute.xlu0 %407 }
 0x1f6   : > { %v410_v3 = vadd.f32 %v408_v2, %v402_v0  ;;  %v411_v4 = vadd.f32 %v408_v2, %v403_v1 }
 0x1f8   : > { %412 = vst [vmem:[%s742_s14] sm:$0xff] %v410_v3 }
 0x1f9   : > { %413 = vst [vmem:[%s742_s14 + $0x8] sm:$0xff] %v411_v4 }
 0x1fa PF: > { %s14_s21 = sadd.s32 1, %s644_s21   ;;  %s786_s15 = smov %s624_s16 }
 0x1fb   : > { %p11_p4 = scmp.ge.s32.totalorder %s14_s21, 6   ;;  %s787_s16 = smov %s722_s26 }
 0x1fc   : > { %s788_s17 = smov %s636_s19  ;;  %s789_s18 = smov %s640_s20 }
 0x1fd   : > { %s790_s19 = smov %s793_s22  ;;  %s791_s20 = smov %s797_s23 }
 0x1fe   :  { %13 = sbr.rel (!%p11_p4) target bundleno = 4 (0x4), region = 125 }

</bundles_post_ra>
